<compile_context>
chip_gen: v5e
topology: v5e:2x2
jax: 0.10.0
libtpu: 0.0.40
codegen_flags: <defaults>
</compile_context>

<pallas_src>
import functools

import jax
import jax.numpy as jnp
from jax import lax
from jax.experimental import pallas as pl
from jax.experimental.pallas import tpu as pltpu


# ----------------------------------------------------------------------------- kernel


def _mlp_kernel(x_ref, *refs, chunk_rows, n_layers):
    """refs = (w1_rep, b1_rep, ..., wL_rep, bL_rep, o_ref).

    x_ref:  (block_rows, 128)            lane-packed input (pack samples per row)
    w_rep:  (pack*n_l, pack*n_{l+1})     block-diagonal replicated weights (MXU dtype)
    b_rep:  (1, pack*n_{l+1})            tiled biases (f32)
    o_ref:  (block_rows, pack*n_out)     lane-packed output
    """
    o_ref = refs[-1]
    wb = refs[:-1]
    n_chunks = x_ref.shape[0] // chunk_rows  # static

    def chunk_body(j, carry):
        r0 = pl.multiple_of(j * chunk_rows, chunk_rows)
        a = x_ref[pl.ds(r0, chunk_rows), :]
        for layer in range(n_layers):
            w = wb[2 * layer][...]
            b = wb[2 * layer + 1][...]
            # MXU matmul in the weight dtype, f32 accumulation; f32 bias add.
            z = jnp.dot(a.astype(w.dtype), w, preferred_element_type=jnp.float32) + b
            if layer < n_layers - 1:
                a = jnp.maximum(z, 0.0)                               # ReLU (VPU, f32)
            else:
                # sigmoid(z) = 1 / (1 + exp(-z)): exp on the EUP, approx reciprocal
                # keeps the VALU slot free.
                a = pl.reciprocal(1.0 + jnp.exp(-z), approx=True)
        o_ref[pl.ds(r0, chunk_rows), :] = a.astype(o_ref.dtype)
        return carry

    lax.fori_loop(0, n_chunks, chunk_body, 0)


# ----------------------------------------------------------------------------- tiling


def _plan_tiling(n_samples, pack):
    """Pick (padded sample count, outer block rows, inner chunk rows).

    One "row" of the lane-packed layout holds `pack` samples across 128 lanes.
    Targets:
      * outer blocks of up to ~64K samples so per-block DMA amortizes the ~0.35 us
        fixed per-grid-step overhead,
      * >= 4 grid steps when there is enough work (v7x: 2 TCs x double buffering),
      * inner chunks of a few thousand samples so f32 intermediates stay ~1 MB,
      * minimal batch padding (chunk size is re-fit to the actual row count).
    """
    chunk_rows_max = 4096 // pack          # ~4K samples per inner compute chunk
    max_chunks_per_block = 16              # up to ~64K samples DMA'd per grid step

    rows = -(-n_samples // pack)
    if rows <= chunk_rows_max:             # small batch: one block, one chunk
        rows = max(16, -(-rows // 16) * 16)
        return rows * pack, rows, rows

    n_chunks = -(-rows // chunk_rows_max)
    n_blocks = max(min(n_chunks, 4), -(-n_chunks // max_chunks_per_block))
    chunks_per_block = -(-n_chunks // n_blocks)
    total_chunks = n_blocks * chunks_per_block
    chunk_rows = -(-rows // total_chunks)
    chunk_rows = max(16, -(-chunk_rows // 16) * 16)   # keep sublane tiling aligned
    block_rows = chunks_per_block * chunk_rows
    return n_blocks * block_rows * pack, block_rows, chunk_rows


# ----------------------------------------------------------------------------- wrapper


def _block_diag_replicate(w, pack):
    """w: [n_out, n_in] (PyTorch nn.Linear layout) -> [pack*n_in, pack*n_out] with
    w^T repeated `pack` times along the diagonal (off-diagonal blocks are zero)."""
    n_out, n_in = w.shape
    eye = jnp.eye(pack, dtype=w.dtype)
    rep = jnp.einsum("st,of->sfto", eye, w)            # [pack, n_in, pack, n_out]
    return rep.reshape(pack * n_in, pack * n_out)


def coder_forward(x, params):
    """Coder forward pass.

    x:      [B, n_in]
    params: list of (w, b) per layer, w: [n2, n1] (PyTorch layout), b: [n2].
    Hidden layers use ReLU, the last layer uses Sigmoid (the module's defaults).
    Returns [B, n_out] in x's dtype.
    """
    B, n_in = x.shape
    if 128 % n_in != 0:
        # TODO(synk): pad n_in up to a divisor of 128 to support arbitrary widths.
        raise NotImplementedError("n_in must divide 128 for the lane-packed layout")
    pack = 128 // n_in
    n_layers = len(params)
    dims = [n_in] + [w.shape[0] for w, _ in params]
    n_out = dims[-1]
    out_lanes = pack * n_out

    # Pack-way block-diagonal weights / tiled biases (tiny: a few tens of KB).
    flat_wb = []
    for w, b in params:
        flat_wb.append(_block_diag_replicate(w, pack))
        flat_wb.append(jnp.tile(b.reshape(-1).astype(jnp.float32), pack).reshape(1, -1))

    B_pad, block_rows, chunk_rows = _plan_tiling(B, pack)
    rows = B_pad // pack
    if B_pad != B:
        x = jnp.pad(x, ((0, B_pad - B), (0, 0)))
    x2 = x.reshape(rows, 128)                 # free row-major regroup, NOT a transpose
    grid = rows // block_rows

    in_specs = [pl.BlockSpec((block_rows, 128), lambda i: (i, 0))]
    for a in flat_wb:
        in_specs.append(pl.BlockSpec(a.shape, lambda i: (0, 0)))   # resident, no re-DMA

    cost = pl.CostEstimate(
        flops=2 * B_pad * sum(d1 * d2 for d1, d2 in zip(dims[:-1], dims[1:])),
        transcendentals=B_pad * n_out,
        bytes_accessed=(x2.size * x2.dtype.itemsize
                        + sum(a.size * a.dtype.itemsize for a in flat_wb)
                        + rows * out_lanes * x.dtype.itemsize),
    )

    y2 = pl.pallas_call(
        functools.partial(_mlp_kernel, chunk_rows=chunk_rows, n_layers=n_layers),
        out_shape=jax.ShapeDtypeStruct((rows, out_lanes), x.dtype),
        grid_spec=pltpu.PrefetchScalarGridSpec(
            num_scalar_prefetch=0,
            grid=(grid,),
            in_specs=in_specs,
            out_specs=pl.BlockSpec((block_rows, out_lanes), lambda i: (i, 0)),
        ),
        compiler_params=pltpu.CompilerParams(
            dimension_semantics=("parallel",),        # batch blocks shard across cores
            vmem_limit_bytes=32 * 1024 * 1024,        # lift v5e's 16 MiB default
        ),
        cost_estimate=cost,
    )(x2, *flat_wb)

    y = y2.reshape(B_pad, n_out)              # free row-major regroup
    return y if B_pad == B else y[:B]


# ----------------------------------------------------------------------------- helpers


def init_linear_params(key, n_in, n_out, w_dtype=jnp.bfloat16):
    """nn.Linear-style init, U(-1/sqrt(fan_in), 1/sqrt(fan_in)); bf16 W, f32 b."""
    kw, kb = jax.random.split(key)
    bound = 1.0 / (n_in ** 0.5)
    w = jax.random.uniform(kw, (n_out, n_in), jnp.float32, -bound, bound).astype(w_dtype)
    b = jax.random.uniform(kb, (n_out,), jnp.float32, -bound, bound)
    return w, b


def ref_forward(x, params):
    """Pure-JAX f32 reference of the Coder forward (ReLU hidden, Sigmoid output)."""
    a = x.astype(jnp.float32)
    for i, (w, b) in enumerate(params):
        z = a @ w.astype(jnp.float32).T + b.astype(jnp.float32)
        a = jnp.maximum(z, 0.0) if i < len(params) - 1 else jax.nn.sigmoid(z)
    return a


if __name__ == "__main__":
    # Coder(n_in=16, n_out=8, n_hid=[32], output_activation=Sigmoid)
    n_in, n_hid, n_out = 16, 32, 8
    key = jax.random.PRNGKey(0)
    kx, k1, k2, kx2 = jax.random.split(key, 4)
    params = [init_linear_params(k1, n_in, n_hid),
              init_linear_params(k2, n_hid, n_out)]

    # Small demo batch: single block, single inner chunk.
    B = 256
    x = jax.random.normal(kx, (B, n_in), jnp.float32).astype(jnp.bfloat16)
    out = jax.block_until_ready(coder_forward(x, params))
    ref = ref_forward(x, params)
    assert out.shape == (B, n_out)
    assert jnp.allclose(out.astype(jnp.float32), ref, atol=2e-2, rtol=2e-2)

    # A batch that is not a multiple of the block quantum: exercises the padding,
    # the multi-step ("parallel") grid, and the inner chunk loop.
    B2 = 40960
    xl = jax.random.normal(kx2, (B2, n_in), jnp.float32).astype(jnp.bfloat16)
    out2 = jax.block_until_ready(coder_forward(xl, params))
    ref2 = ref_forward(xl, params)
    assert out2.shape == (B2, n_out)
    assert jnp.allclose(out2.astype(jnp.float32), ref2, atol=2e-2, rtol=2e-2)

    print("KERNEL_OK")
</pallas_src>

<mosaic_0001>
module attributes {stable_mosaic.version = 11 : i64} {
  func.func @_mlp_kernel(%arg0: i32, %arg1: memref<32x128xbf16, #tpu.memory_space<vmem>>, %arg2: memref<128x256xbf16, #tpu.memory_space<vmem>>, %arg3: memref<1x256xf32, #tpu.memory_space<vmem>>, %arg4: memref<256x64xbf16, #tpu.memory_space<vmem>>, %arg5: memref<1x64xf32, #tpu.memory_space<vmem>>, %arg6: memref<32x64xbf16, #tpu.memory_space<vmem>>) attributes {dimension_semantics = [#tpu.dimension_semantics<parallel>], iteration_bounds = array<i64: 1>, scalar_prefetch = 0 : i64, scratch_operands = 0 : i64, tpu.core_type = #tpu.core_type<tc>, window_params = [{transform_indices = @transform_0, window_bounds = array<i64: 32, 128>}, {pipeline_mode = #tpu.pipeline_mode<synchronous>, transform_indices = @transform_1, window_bounds = array<i64: 128, 256>}, {pipeline_mode = #tpu.pipeline_mode<synchronous>, transform_indices = @transform_2, window_bounds = array<i64: 1, 256>}, {pipeline_mode = #tpu.pipeline_mode<synchronous>, transform_indices = @transform_3, window_bounds = array<i64: 256, 64>}, {pipeline_mode = #tpu.pipeline_mode<synchronous>, transform_indices = @transform_4, window_bounds = array<i64: 1, 64>}, {transform_indices = @transform_5, window_bounds = array<i64: 32, 64>}]} {
    %c0_i32 = arith.constant 0 : i32
    %c32_i32 = arith.constant 32 : i32
    %0 = arith.muli %c0_i32, %c32_i32 : i32
    %1 = tpu.assume_multiple %0, 32 : i32
    %2 = arith.index_cast %1 : i32 to index
    %c0 = arith.constant 0 : index
    %3 = vector.load %arg1[%2, %c0] : memref<32x128xbf16, #tpu.memory_space<vmem>>, vector<32x128xbf16>
    %c0_0 = arith.constant 0 : index
    %c0_1 = arith.constant 0 : index
    %4 = vector.load %arg2[%c0_0, %c0_1] : memref<128x256xbf16, #tpu.memory_space<vmem>>, vector<128x256xbf16>
    %c0_2 = arith.constant 0 : index
    %c0_3 = arith.constant 0 : index
    %5 = vector.load %arg3[%c0_2, %c0_3] : memref<1x256xf32, #tpu.memory_space<vmem>>, vector<1x256xf32>
    %cst = arith.constant dense<0.000000e+00> : vector<32x256xf32>
    %6 = tpu.matmul %3, %4, %cst {dimension_numbers = #tpu.dot_dimension_numbers<[1], [0], [0], [1], [0, 0, 1, 1], [], []>} : vector<32x128xbf16>, vector<128x256xbf16>, vector<32x256xf32> -> vector<32x256xf32>
    %7 = vector.broadcast %5 : vector<1x256xf32> to vector<32x256xf32>
    %8 = arith.addf %6, %7 : vector<32x256xf32>
    %cst_4 = arith.constant 0.000000e+00 : f32
    %9 = vector.broadcast %cst_4 : f32 to vector<32x256xf32>
    %10 = arith.maximumf %8, %9 : vector<32x256xf32>
    %c0_5 = arith.constant 0 : index
    %c0_6 = arith.constant 0 : index
    %11 = vector.load %arg4[%c0_5, %c0_6] : memref<256x64xbf16, #tpu.memory_space<vmem>>, vector<256x64xbf16>
    %c0_7 = arith.constant 0 : index
    %c0_8 = arith.constant 0 : index
    %12 = vector.load %arg5[%c0_7, %c0_8] : memref<1x64xf32, #tpu.memory_space<vmem>>, vector<1x64xf32>
    %13 = arith.truncf %10 : vector<32x256xf32> to vector<32x256xbf16>
    %cst_9 = arith.constant dense<0.000000e+00> : vector<32x64xf32>
    %14 = tpu.matmul %13, %11, %cst_9 {dimension_numbers = #tpu.dot_dimension_numbers<[1], [0], [0], [1], [0, 0, 1, 1], [], []>} : vector<32x256xbf16>, vector<256x64xbf16>, vector<32x64xf32> -> vector<32x64xf32>
    %15 = vector.broadcast %12 : vector<1x64xf32> to vector<32x64xf32>
    %16 = arith.addf %14, %15 : vector<32x64xf32>
    %cst_10 = arith.constant 0.000000e+00 : f32
    %17 = vector.broadcast %cst_10 : f32 to vector<32x64xf32>
    %18 = arith.subf %17, %16 : vector<32x64xf32>
    %19 = math.exp %18 : vector<32x64xf32>
    %cst_11 = arith.constant 1.000000e+00 : f32
    %20 = vector.broadcast %cst_11 : f32 to vector<32x64xf32>
    %21 = arith.addf %20, %19 : vector<32x64xf32>
    %22 = tpu.reciprocal %21 {approx = true} : vector<32x64xf32> -> vector<32x64xf32>
    %23 = arith.truncf %22 : vector<32x64xf32> to vector<32x64xbf16>
    %24 = arith.index_cast %1 : i32 to index
    %c0_12 = arith.constant 0 : index
    %25 = vector.load %arg6[%24, %c0_12] : memref<32x64xbf16, #tpu.memory_space<vmem>>, vector<32x64xbf16>
    tpu.vector_store %arg6[%24, %c0_12], %23 {strides = array<i32>} : memref<32x64xbf16, #tpu.memory_space<vmem>>, vector<32x64xbf16>,
    %c1_i32 = arith.constant 1 : i32
    return
  }
  func.func @transform_0(%arg0: i32) -> (i32, i32) {
    %c0_i32 = arith.constant 0 : i32
    %c0_i32_0 = arith.constant 0 : i32
    return %arg0, %c0_i32 : i32, i32
  }
  func.func @transform_1(%arg0: i32) -> (i32, i32) {
    %c0_i32 = arith.constant 0 : i32
    %c0_i32_0 = arith.constant 0 : i32
    %c0_i32_1 = arith.constant 0 : i32
    return %c0_i32, %c0_i32_0 : i32, i32
  }
  func.func @transform_2(%arg0: i32) -> (i32, i32) {
    %c0_i32 = arith.constant 0 : i32
    %c0_i32_0 = arith.constant 0 : i32
    %c0_i32_1 = arith.constant 0 : i32
    return %c0_i32, %c0_i32_0 : i32, i32
  }
  func.func @transform_3(%arg0: i32) -> (i32, i32) {
    %c0_i32 = arith.constant 0 : i32
    %c0_i32_0 = arith.constant 0 : i32
    %c0_i32_1 = arith.constant 0 : i32
    return %c0_i32, %c0_i32_0 : i32, i32
  }
  func.func @transform_4(%arg0: i32) -> (i32, i32) {
    %c0_i32 = arith.constant 0 : i32
    %c0_i32_0 = arith.constant 0 : i32
    %c0_i32_1 = arith.constant 0 : i32
    return %c0_i32, %c0_i32_0 : i32, i32
  }
  func.func @transform_5(%arg0: i32) -> (i32, i32) {
    %c0_i32 = arith.constant 0 : i32
    %c0_i32_0 = arith.constant 0 : i32
    return %arg0, %c0_i32 : i32, i32
  }
}

</mosaic_0001>

<bundles_post_ra>
// kernel: tpu_custom_call.1
= control target key start
LH: loop header
LB: loop body
LE: loop exit
PB: predicated region body
PF: predicated region fallthrough
CT: control target
= control target key end

     0   :  { %s818_s0 = inlined_call_operand.vmem [shape: bf16[32,128], index: 0, kind: input, shape index: {}]   ;;  %s819_s1 = inlined_call_operand.vmem [shape: bf16[128,256], index: 1, kind: input, shape index: {}]   ;;  %s820_s2 = inlined_call_operand.vmem [shape: f32[1,256], index: 2, kind: input, shape index: {}]   ;;  %s821_s3 = inlined_call_operand.vmem [shape: bf16[256,64], index: 3, kind: input, shape index: {}]   ;;  %s822_s4 = inlined_call_operand.vmem [shape: f32[1,64], index: 4, kind: input, shape index: {}]   ;;  %s823_s5 = inlined_call_operand.hbm [shape: bf16[32,64], index: 5, kind: output, shape index: {}]  }
   0x1   :  { %v472_v0 = vld [vmem:[%s819_s1 + $0x70] sm:$0xf]  ;;  %v559_v1 = vld [vmem:[%s819_s1 + $0x74] sm:$0xf0]  ;;  %v558_v2 = vld [vmem:[%s819_s1 + $0x74] sm:$0xf] }
   0x2   :  { %v473_v3 = vor.u32 %v559_v1, %v472_v0  ;;  %v474_v4 = vld [vmem:[%s819_s1 + $0x78] sm:$0xf0]  ;;  %v464_v5 = vld [vmem:[%s819_s1 + $0x60] sm:$0xf]  ;;  %v557_v6 = vld [vmem:[%s819_s1 + $0x64] sm:$0xf0] }
   0x3   :  { %v477_v7 = vor.u32 %v558_v2, %v474_v4  ;;  %v556_v8 = vld [vmem:[%s819_s1 + $0x64] sm:$0xf]  ;;  %v466_v9 = vld [vmem:[%s819_s1 + $0x68] sm:$0xf0]  ;;  %v465_v10 = vor.u32 %v557_v6, %v464_v5  ;;  %v456_v12 = vld [vmem:[%s819_s1 + $0x50] sm:$0xf] }
   0x4   :  { %139 = vmatpush.bf16.msra.mxu0 %v473_v3  ;;  %v469_v11 = vor.u32 %v556_v8, %v466_v9  ;;  %v555_v13 = vld [vmem:[%s819_s1 + $0x54] sm:$0xf0]  ;;  %v554_v14 = vld [vmem:[%s819_s1 + $0x54] sm:$0xf]  ;;  %v458_v15 = vld [vmem:[%s819_s1 + $0x58] sm:$0xf0] }
   0x5   :  { %158 = vmatpush.bf16.msra.mxu1 %v477_v7  ;;  %v457_v16 = vor.u32 %v555_v13, %v456_v12  ;;  %v461_v17 = vor.u32 %v554_v14, %v458_v15  ;;  %v448_v18 = vld [vmem:[%s819_s1 + $0x40] sm:$0xf]  ;;  %v553_v19 = vld [vmem:[%s819_s1 + $0x44] sm:$0xf0]  ;;  %v552_v20 = vld [vmem:[%s819_s1 + $0x44] sm:$0xf] }
   0x6   :  { %v450_v21 = vld [vmem:[%s819_s1 + $0x48] sm:$0xf0]  ;;  %v449_v22 = vor.u32 %v553_v19, %v448_v18 }
   0x8   :  { %140 = vmatpush.bf16.msra.mxu0 %v465_v10 }
   0x9   :  { %159 = vmatpush.bf16.msra.mxu1 %v469_v11 }
   0xc   :  { %141 = vmatpush.bf16.msra.mxu0 %v457_v16 }
   0xd   :  { %10 = vsyncpa [#allocation3], 0  ;;  %160 = vmatpush.bf16.msra.mxu1 %v461_v17  ;;  %v453_v23 = vor.u32 %v552_v20, %v450_v21  ;;  %v440_v24 = vld [vmem:[%s819_s1 + $0x30] sm:$0xf]  ;;  %v551_v25 = vld [vmem:[%s819_s1 + $0x34] sm:$0xf0] }
   0xe   :  { %v550_v26 = vld [vmem:[%s819_s1 + $0x34] sm:$0xf]  ;;  %v442_v27 = vld [vmem:[%s819_s1 + $0x38] sm:$0xf0]  ;;  %v441_v28 = vor.u32 %v551_v25, %v440_v24  ;;  %v432_v30 = vld [vmem:[%s819_s1 + $0x20] sm:$0xf] }
   0xf   :  { %v445_v29 = vor.u32 %v550_v26, %v442_v27  ;;  %v549_v31 = vld [vmem:[%s819_s1 + $0x24] sm:$0xf0]  ;;  %v548_v32 = vld [vmem:[%s819_s1 + $0x24] sm:$0xf]  ;;  %v434_v33 = vld [vmem:[%s819_s1 + $0x28] sm:$0xf0] }
  0x10   :  { %142 = vmatpush.bf16.msra.mxu0 %v449_v22  ;;  %v433_v34 = vor.u32 %v549_v31, %v432_v30  ;;  %v567_v35 = vld [vmem:[%s821_s3 + $0x38] sm:$0xff]  ;;  %v437_v37 = vor.u32 %v548_v32, %v434_v33  ;;  %v424_v38 = vld [vmem:[%s819_s1 + $0x10] sm:$0xf]  ;;  %v546_v40 = vld [vmem:[%s819_s1 + $0x14] sm:$0xf]  ;;  %vm383_vm0 = vcmask 519168  }
  0x11   :  { %161 = vmatpush.bf16.msra.mxu1 %v453_v23  ;;  %v575_v36 = vld [vmem:[%s821_s3 + $0x78] sm:$0xff]  ;;  %321 = vmatpush.bf16.msra.mxu2 %v567_v35  ;;  %v566_v42 = vld [vmem:[%s821_s3 + $0x30] sm:$0xff]  ;;  %v416_v46 = vld [vmem:[%s819_s1] sm:$0xf]  ;;  %s623_s21 = smov 64   ;;  %s624_s22 = smov 4  }
  0x12   :  { %v547_v39 = vld [vmem:[%s819_s1 + $0x14] sm:$0xf0]  ;;  %v426_v41 = vld [vmem:[%s819_s1 + $0x18] sm:$0xf0]  ;;  %340 = vmatpush.bf16.msra.mxu3 %v575_v36  ;;  %v574_v43 = vld [vmem:[%s821_s3 + $0x70] sm:$0xff] }
  0x13   :  { %v425_v44 = vor.u32 %v547_v39, %v424_v38  ;;  %v429_v45 = vor.u32 %v546_v40, %v426_v41  ;;  %v545_v47 = vld [vmem:[%s819_s1 + $0x4] sm:$0xf0]  ;;  %v544_v48 = vld [vmem:[%s819_s1 + $0x4] sm:$0xf]  ;;  %v418_v49 = vld [vmem:[%s819_s1 + $0x8] sm:$0xf0] }
  0x14   :  { %143 = vmatpush.bf16.msra.mxu0 %v441_v28  ;;  %v565_v50 = vld [vmem:[%s821_s3 + $0x28] sm:$0xff]  ;;  %v417_v52 = vor.u32 %v545_v47, %v416_v46  ;;  %v421_v53 = vor.u32 %v544_v48, %v418_v49  ;;  %v564_v54 = vld [vmem:[%s821_s3 + $0x20] sm:$0xff]  ;;  %v563_v58 = vld [vmem:[%s821_s3 + $0x18] sm:$0xff]  ;;  %s394_s1 = sshll.u32 %s823_s5, 4  ;;  %s395_s1 = int_to_ptr.hbm [resolvable:$true] %s394_s1 }
  0x15   :  { %162 = vmatpush.bf16.msra.mxu1 %v445_v29  ;;  %322 = vmatpush.bf16.msra.mxu2 %v566_v42  ;;  %v573_v51 = vld [vmem:[%s821_s3 + $0x68] sm:$0xff]  ;;  %v572_v55 = vld [vmem:[%s821_s3 + $0x60] sm:$0xff]  ;;  %v571_v59 = vld [vmem:[%s821_s3 + $0x58] sm:$0xff] }
  0x16   :  { %341 = vmatpush.bf16.msra.mxu3 %v574_v43  ;;  %v542_v56 = vld [vmem:[%s818_s0] sm:$0xff]  ;;  %v543_v57 = vld [vmem:[%s818_s0 + $0x8] sm:$0xff]  ;;  %v562_v60 = vld [vmem:[%s821_s3 + $0x10] sm:$0xff] }
  0x17   :  { %v570_v61 = vld [vmem:[%s821_s3 + $0x50] sm:$0xff]  ;;  %v561_v62 = vld [vmem:[%s821_s3 + $0x8] sm:$0xff]  ;;  %v560_v0 = vld [vmem:[%s821_s3] sm:$0xff] }
  0x18   :  { %144 = vmatpush.bf16.msra.mxu0 %v433_v34  ;;  %v569_v63 = vld [vmem:[%s821_s3 + $0x48] sm:$0xff]  ;;  %v568_v1 = vld [vmem:[%s821_s3 + $0x40] sm:$0xff] }
  0x19   :  { %163 = vmatpush.bf16.msra.mxu1 %v437_v37  ;;  %323 = vmatpush.bf16.msra.mxu2 %v565_v50  ;;  %v41_v2 = vld [vmem:[%s820_s2] sm:$0x3] }
  0x1a   :  { %342 = vmatpush.bf16.msra.mxu3 %v573_v51  ;;  %v43_v5 = vperm.slane %v41_v2, 0  ;;  %v44_v6 = vperm.slane %v41_v2, 1  ;;  %v579_v33 = vld [vmem:[%s822_s4] ss:$0 sm:$0xff]  ;;  %s622_s4 = smov [#allocation2]  }
  0x1b   :  { %s392_s18 = sshll.u32 %s622_s4, 4  ;;  %s393_s18 = int_to_ptr.vmem [resolvable:$true] %s392_s18 }
  0x1c   :  { %145 = vmatpush.bf16.msra.mxu0 %v425_v44 }
  0x1d   :  { %164 = vmatpush.bf16.msra.mxu1 %v429_v45  ;;  %324 = vmatpush.bf16.msra.mxu2 %v564_v54 }
  0x1e   :  { %343 = vmatpush.bf16.msra.mxu3 %v572_v55 }
  0x20   :  { %146 = vmatpush.bf16.msra.mxu0 %v417_v52 }
  0x21   :  { %165 = vmatpush.bf16.msra.mxu1 %v421_v53  ;;  %325 = vmatpush.bf16.msra.mxu2 %v563_v58 }
  0x22   :  { %344 = vmatpush.bf16.msra.mxu3 %v571_v59 }
  0x23   :  { %147 = vmatmul.bf16.vlgmr.msra.gmra.mxu0 %v542_v56 }
  0x24   :  { %166 = vmatmul.bf16.vlgmr.msra.gmra.mxu1 %v542_v56 }
  0x25   :  { %326 = vmatpush.bf16.msra.mxu2 %v562_v60 }
  0x26   :  { %345 = vmatpush.bf16.msra.mxu3 %v570_v61 }
  0x29   :  { %327 = vmatpush.bf16.msra.mxu2 %v561_v62 }
  0x2a   :  { %346 = vmatpush.bf16.msra.mxu3 %v569_v63 }
  0x2d   :  { %328 = vmatpush.bf16.msra.mxu2 %v560_v0 }
  0x2e   :  { %347 = vmatpush.bf16.msra.mxu3 %v568_v1 }
  0x33   :  { %152 = vmatmul.bf16.gmra.mxu0 %v543_v57 }
  0x34   :  { %171 = vmatmul.bf16.gmra.mxu1 %v543_v57 }
  0xa0   :  { %v148_v3 = vpop.f32.mrf.mxu0 }
  0xa1   :  { %v167_v4 = vpop.f32.mrf.mxu1  ;;  %v149_v7 = vadd.f32 %v148_v3, %v43_v5 }
  0xa2   :  { %v168_v8 = vadd.f32 %v167_v4, %v44_v6 }
  0xa3   :  { %v177_v13 = vmax.f32 %v149_v7, 0.0 }
  0xa4   :  { %v178_v15 = vmax.f32 %v168_v8, 0.0 }
  0xa8   :  { %v150_v9 = vpop.f32.mrf.mxu0 }
  0xa9   :  { %v151_v10 = vadd.f32 %v150_v9, %v43_v5  ;;  %v169_v11 = vpop.f32.mrf.mxu1 }
  0xaa   :  { %v170_v12 = vadd.f32 %v169_v11, %v44_v6 }
  0xab   :  { %v179_v14 = vmax.f32 %v151_v10, 0.0 }
  0xac   :  { %v180_v16 = vmax.f32 %v170_v12, 0.0 }
  0xad   :  { %v218_v17 = vpack.c.bf16 %v179_v14, %v177_v13 }
  0xae   :  { %v219_v18 = vpack.c.bf16 %v180_v16, %v178_v15 }
  0xaf   :  { %329 = vmatmul.bf16.vlgmr.msra.gmra.mxu2 %v218_v17 }
  0xb0   :  { %348 = vmatmul.bf16.vlgmr.msra.gmra.mxu3 %v219_v18  ;;  %v153_v19 = vpop.f32.mrf.mxu0 }
  0xb1   :  { %v172_v20 = vpop.f32.mrf.mxu1  ;;  %v154_v21 = vadd.f32 %v153_v19, %v43_v5 }
  0xb2   :  { %v173_v22 = vadd.f32 %v172_v20, %v44_v6 }
  0xb3   :  { %v181_v27 = vmax.f32 %v154_v21, 0.0 }
  0xb4   :  { %v182_v29 = vmax.f32 %v173_v22, 0.0 }
  0xb8   :  { %v155_v23 = vpop.f32.mrf.mxu0 }
  0xb9   :  { %v156_v24 = vadd.f32 %v155_v23, %v43_v5  ;;  %v174_v25 = vpop.f32.mrf.mxu1 }
  0xba   :  { %v175_v26 = vadd.f32 %v174_v25, %v44_v6 }
  0xbb   :  { %v183_v28 = vmax.f32 %v156_v24, 0.0 }
  0xbc   :  { %v184_v30 = vmax.f32 %v175_v26, 0.0 }
  0xbd   :  { %v220_v31 = vpack.c.bf16 %v183_v28, %v181_v27 }
  0xbe   :  { %v221_v32 = vpack.c.bf16 %v184_v30, %v182_v29 }
  0xbf   :  { %334 = vmatmul.bf16.gmra.mxu2 %v220_v31 }
  0xc0   :  { %353 = vmatmul.bf16.gmra.mxu3 %v221_v32 }
 0x132   :  { %v330_v34 = vpop.f32.mrf.mxu2 }
 0x133   :  { %v331_v35 = vadd.f32 %v579_v33, %v330_v34  ;;  %v349_v36 = vpop.f32.mrf.mxu3 }
 0x135   :  { %v350_v37 = vadd.f32 %v349_v36, %v331_v35 }
 0x137   :  { %v359_v38 = vsub.f32 0.0, %v350_v37 }
 0x139   :  { %v363_v39 = vmul.f32 1.442695, %v359_v38 }
 0x13a   :  { %v332_v40 = vpop.f32.mrf.mxu2 }
 0x13b   :  { %580 = vpow2.f32 %v363_v39  ;;  %v333_v41 = vadd.f32 %v579_v33, %v332_v40  ;;  %v351_v42 = vpop.f32.mrf.mxu3 }
 0x13d   :  { %v352_v43 = vadd.f32 %v351_v42, %v333_v41 }
 0x13f   :  { %v360_v44 = vsub.f32 0.0, %v352_v43 }
 0x141   :  { %v581_v45 = vpop.eup %580  ;;  %v365_v46 = vmul.f32 1.442695, %v360_v44 }
 0x142   :  { %v371_v47 = vadd.f32 1.0, %v581_v45  ;;  %v335_v48 = vpop.f32.mrf.mxu2 }
 0x143   :  { %582 = vpow2.f32 %v365_v46  ;;  %v336_v49 = vadd.f32 %v579_v33, %v335_v48  ;;  %v354_v50 = vpop.f32.mrf.mxu3 }
 0x144   :  { %584 = vrcp.f32 %v371_v47 }
 0x145   :  { %v355_v51 = vadd.f32 %v354_v50, %v336_v49 }
 0x147   :  { %v361_v52 = vsub.f32 0.0, %v355_v51 }
 0x149   :  { %v583_v53 = vpop.eup %582  ;;  %v367_v54 = vmul.f32 1.442695, %v361_v52 }
 0x14a   :  { %v585_v55 = vpop.eup %584  ;;  %v372_v56 = vadd.f32 1.0, %v583_v53  ;;  %v337_v57 = vpop.f32.mrf.mxu2 }
 0x14b   :  { %v379_v58 = vpack.c.bf16 %v585_v55, %v585_v55  ;;  %586 = vpow2.f32 %v367_v54  ;;  %v338_v59 = vadd.f32 %v579_v33, %v337_v57  ;;  %v356_v60 = vpop.f32.mrf.mxu3 }
 0x14c   :  { %588 = vrcp.f32 %v372_v56 }
 0x14d   :  { %384 = vst.msk [vmem:[#allocation2] sm:$0xf] %vm383_vm0, %v379_v58  ;;  %v357_v61 = vadd.f32 %v356_v60, %v338_v59 }
 0x14f   :  { %v362_v62 = vsub.f32 0.0, %v357_v61 }
 0x151   :  { %v587_v63 = vpop.eup %586  ;;  %v369_v0 = vmul.f32 1.442695, %v362_v62 }
 0x152   :  { %v589_v1 = vpop.eup %588  ;;  %v373_v2 = vadd.f32 1.0, %v587_v63 }
 0x153   :  { %v380_v3 = vpack.c.bf16 %v589_v1, %v589_v1  ;;  %590 = vpow2.f32 %v369_v0 }
 0x154   :  { %592 = vrcp.f32 %v373_v2 }
 0x155   :  { %385 = vst.msk [vmem:[#allocation2 + $0x4] sm:$0xf] %vm383_vm0, %v380_v3 }
 0x159   :  { %v591_v4 = vpop.eup %590 }
 0x15a   :  { %v593_v5 = vpop.eup %592  ;;  %v374_v6 = vadd.f32 1.0, %v591_v4 }
 0x15b   :  { %v381_v7 = vpack.c.bf16 %v593_v5, %v593_v5 }
 0x15c   :  { %594 = vrcp.f32 %v374_v6 }
 0x15d   :  { %386 = vst.msk [vmem:[#allocation2 + $0x8] sm:$0xf] %vm383_vm0, %v381_v7 }
 0x162   :  { %v595_v8 = vpop.eup %594 }
 0x163   :  { %v382_v9 = vpack.c.bf16 %v595_v8, %v595_v8 }
 0x165   :  { %387 = vst.msk [vmem:[#allocation2 + $0xc] sm:$0xf] %vm383_vm0, %v382_v9 }
 0x166   :  { %400 = dma.vmem_to_hbm [thread:$0]  %s393_s18, 256, %s395_s1, [#allocation3], %s623_s21, %s623_s21, %s624_s22  }
 0x167   :  { %620 = dma.done.wait [#allocation3], 256  }
 0x168   :  { %621 = vsyncadd [#allocation3], 4294967040 }
 0x169   :  { %405 = vsyncpa [#allocation3], 1 }

</bundles_post_ra>
